<compile_context>
chip_gen: v7x
topology: tpu7x:2x2x1
jax: 0.10.0
libtpu: 0.0.40
codegen_flags: <defaults>
</compile_context>

<pallas_src>
import jax
import jax.numpy as jnp
from jax.experimental import pallas as pl
from jax.experimental.pallas import tpu as pltpu

_LANE = 128
_SUBLANE = 8


def _round_up(x: int, m: int) -> int:
    return ((x + m - 1) // m) * m


def _vmem_cap_bytes() -> int:
    """~85% of physical per-core VMEM; conservative fallback if the query fails."""
    try:
        return int(0.85 * pltpu.get_tpu_info().vmem_capacity_bytes)
    except Exception:
        return 48 << 20  # safe on v5e/v6e (128 MiB) and v7x (64 MiB)


def _cls_head_kernel(x_ref, w1_ref, b1_ref, w2_ref, b2_ref, o_ref):
    # dropout (eval) -> dense -> tanh -> dropout (eval) -> proj
    # Cast the activation tile to the MXU operand dtype *in VMEM* (a VPU op that hides
    # under MXU slack) instead of paying an extra HBM round-trip in the wrapper.
    x = x_ref[...].astype(w1_ref.dtype)
    h = jnp.dot(x, w1_ref[...], preferred_element_type=jnp.float32) + b1_ref[...]
    h = jnp.tanh(h)                      # f32 tanh -> EUP
    h = h.astype(w2_ref.dtype)           # back to the MXU operand dtype
    out = jnp.dot(h, w2_ref[...], preferred_element_type=jnp.float32) + b2_ref[...]
    o_ref[...] = out.astype(o_ref.dtype)


def prepare_cls_head_params(w_dense, b_dense, w_proj, b_proj, *,
                            compute_dtype=jnp.bfloat16):
    """One-time (model-load-time) weight preparation.

    Weights are pre-transposed to [in, out] layout (y = x @ W + b), cast to
    `compute_dtype` (bf16 default: bf16-native MXU on every generation and half the
    weight HBM traffic), and the proj output dim is zero-padded to 128 so output
    stores are lane-dense.  Biases stay float32 (bias add / tanh happen in f32).
    Zero padding is exact, so results match the unpadded math bit-for-bit.
    """
    w1 = jnp.asarray(w_dense, dtype=compute_dtype)
    w2 = jnp.asarray(w_proj, dtype=compute_dtype)
    H = w1.shape[0]
    C = w2.shape[1]
    b1 = jnp.asarray(b_dense, dtype=jnp.float32).reshape(1, H)
    b2 = jnp.asarray(b_proj, dtype=jnp.float32).reshape(1, C)
    C_pad = _round_up(C, _LANE)
    if C_pad != C:
        w2 = jnp.pad(w2, ((0, 0), (0, C_pad - C)))
        b2 = jnp.pad(b2, ((0, 0), (0, C_pad - C)))
    return {"w1": w1, "b1": b1, "w2": w2, "b2": b2, "num_classes": C}


def bart_classification_head(x, params, *, block_b=None, out_dtype=jnp.float32):
    """x: [B, H] sentence representations; params from prepare_cls_head_params."""
    w1, b1, w2, b2 = params["w1"], params["b1"], params["w2"], params["b2"]
    C = params["num_classes"]
    B, H = x.shape
    assert w1.shape == (H, H), "w_dense must be pre-transposed [H, H]"
    C_pad = w2.shape[1]

    # ---- batch tiling: balanced tiles, >=2 so both v7x TensorCores get work,
    #      each <= ~512 rows (big enough to sit near the HBM roofline).
    if block_b is None:
        n_tiles = max(2, pl.cdiv(B, 512))
        TB = _round_up(pl.cdiv(B, n_tiles), _SUBLANE)
    else:
        TB = max(_SUBLANE, _round_up(block_b, _SUBLANE))
    grid = (pl.cdiv(B, TB),)   # last block may be partial; Pallas masks its writeback

    # ---- VMEM accounting: x/out tiles double-buffered, weights single-buffered,
    #      plus the f32 intermediate h and the in-kernel cast copy of x.
    w_bytes = (w1.size * w1.dtype.itemsize + w2.size * w2.dtype.itemsize
               + b1.size * 4 + b2.size * 4)
    x_tile = TB * H * x.dtype.itemsize
    out_tile = TB * C_pad * jnp.dtype(out_dtype).itemsize
    h_bytes = TB * H * (4 + w1.dtype.itemsize)
    vmem_needed = 2 * (x_tile + out_tile) + w_bytes + h_bytes
    vmem_limit = int(min(max(int(1.5 * vmem_needed), 8 << 20), _vmem_cap_bytes()))

    cost = pl.CostEstimate(
        flops=2 * B * H * H + 2 * B * H * C_pad,
        transcendentals=B * H,
        bytes_accessed=(x.size * x.dtype.itemsize + w_bytes
                        + B * C_pad * jnp.dtype(out_dtype).itemsize),
    )

    def _make_call(single_buffer_weights):
        # Constant index_map -> weights/biases never change across grid steps; single
        # buffer halves their VMEM footprint (matters under v7x's 64 MiB budget).
        wkw = {"pipeline_mode": pl.Buffered(1)} if single_buffer_weights else {}
        in_specs = [
            pl.BlockSpec((TB, H), lambda i: (i, 0)),             # x: tiled over batch
            pl.BlockSpec((H, H), lambda i: (0, 0), **wkw),       # w_dense: resident
            pl.BlockSpec((1, H), lambda i: (0, 0), **wkw),       # b_dense: resident
            pl.BlockSpec((H, C_pad), lambda i: (0, 0), **wkw),   # w_proj: resident
            pl.BlockSpec((1, C_pad), lambda i: (0, 0), **wkw),   # b_proj: resident
        ]
        return pl.pallas_call(
            _cls_head_kernel,
            out_shape=jax.ShapeDtypeStruct((B, C_pad), out_dtype),
            grid_spec=pltpu.PrefetchScalarGridSpec(
                num_scalar_prefetch=0,
                grid=grid,
                in_specs=in_specs,
                out_specs=pl.BlockSpec((TB, C_pad), lambda i: (i, 0)),
            ),
            compiler_params=pltpu.CompilerParams(
                dimension_semantics=("parallel",),  # batch tiles shard across v7x TCs
                vmem_limit_bytes=vmem_limit,
            ),
            cost_estimate=cost,
        )

    try:
        out = _make_call(True)(x, w1, b1, w2, b2)
    except Exception:
        # Fallback if single-buffered (pl.Buffered(1)) resident operands are rejected.
        out = _make_call(False)(x, w1, b1, w2, b2)

    return out[:, :C]


def _init_linear(key, fan_in, fan_out):
    # nn.Linear-style uniform(-1/sqrt(fan_in), 1/sqrt(fan_in)); weight pre-transposed
    # to [in, out], bias as [1, out].
    kw, kb = jax.random.split(key)
    bound = 1.0 / (fan_in ** 0.5)
    w = jax.random.uniform(kw, (fan_in, fan_out), jnp.float32, -bound, bound)
    b = jax.random.uniform(kb, (1, fan_out), jnp.float32, -bound, bound)
    return w, b


if __name__ == "__main__":
    hidden_size = 32
    num_classes = 3
    batch = 4

    key = jax.random.PRNGKey(0)
    k_x, k_dense, k_proj, k_x2 = jax.random.split(key, 4)

    x = jax.random.normal(k_x, (batch, hidden_size), jnp.float32)
    w_dense, b_dense = _init_linear(k_dense, hidden_size, hidden_size)
    w_proj, b_proj = _init_linear(k_proj, hidden_size, num_classes)

    ref = jnp.tanh(x @ w_dense + b_dense) @ w_proj + b_proj

    # exact f32 operand path (correctness check)
    params_f32 = prepare_cls_head_params(w_dense, b_dense, w_proj, b_proj,
                                         compute_dtype=jnp.float32)
    out = jax.block_until_ready(bart_classification_head(x, params_f32))
    assert out.shape == (batch, num_classes)
    assert jnp.allclose(out, ref, atol=1e-5, rtol=1e-5), "f32 mismatch vs reference"

    # default bf16 MXU-operand path (f32 accumulation / bias / tanh)
    params_bf16 = prepare_cls_head_params(w_dense, b_dense, w_proj, b_proj)
    out_bf16 = jax.block_until_ready(bart_classification_head(x, params_bf16))
    assert out_bf16.shape == (batch, num_classes)
    assert jnp.allclose(out_bf16, ref, atol=5e-2, rtol=5e-2), "bf16 mismatch vs reference"

    # multi-tile path with a partial last block (B=20, TB=8 -> grid=3, no batch padding)
    x2 = jax.random.normal(k_x2, (20, hidden_size), jnp.float32)
    ref2 = jnp.tanh(x2 @ w_dense + b_dense) @ w_proj + b_proj
    out2 = jax.block_until_ready(bart_classification_head(x2, params_f32, block_b=8))
    assert out2.shape == (20, num_classes)
    assert jnp.allclose(out2, ref2, atol=1e-5, rtol=1e-5), "multi-tile mismatch vs reference"

    print("KERNEL_OK")
</pallas_src>

<mosaic_0001>
module attributes {stable_mosaic.version = 11 : i64} {
  func.func @_cls_head_kernel(%arg0: i32, %arg1: memref<8x32xf32, #tpu.memory_space<vmem>>, %arg2: memref<32x32xf32, #tpu.memory_space<vmem>>, %arg3: memref<1x32xf32, #tpu.memory_space<vmem>>, %arg4: memref<32x128xf32, #tpu.memory_space<vmem>>, %arg5: memref<1x128xf32, #tpu.memory_space<vmem>>, %arg6: memref<8x128xf32, #tpu.memory_space<vmem>>) attributes {dimension_semantics = [#tpu.dimension_semantics<parallel>], iteration_bounds = array<i64: 1>, scalar_prefetch = 0 : i64, scratch_operands = 0 : i64, tpu.core_type = #tpu.core_type<tc>, window_params = [{transform_indices = @transform_0, window_bounds = array<i64: 8, 32>}, {pipeline_mode = #tpu.pipeline_mode<synchronous>, transform_indices = @transform_1, window_bounds = array<i64: 32, 32>}, {pipeline_mode = #tpu.pipeline_mode<synchronous>, transform_indices = @transform_2, window_bounds = array<i64: 1, 32>}, {pipeline_mode = #tpu.pipeline_mode<synchronous>, transform_indices = @transform_3, window_bounds = array<i64: 32, 128>}, {pipeline_mode = #tpu.pipeline_mode<synchronous>, transform_indices = @transform_4, window_bounds = array<i64: 1, 128>}, {transform_indices = @transform_5, window_bounds = array<i64: 8, 128>}]} {
    %c0 = arith.constant 0 : index
    %c0_0 = arith.constant 0 : index
    %0 = vector.load %arg1[%c0, %c0_0] : memref<8x32xf32, #tpu.memory_space<vmem>>, vector<8x32xf32>
    %c0_1 = arith.constant 0 : index
    %c0_2 = arith.constant 0 : index
    %1 = vector.load %arg2[%c0_1, %c0_2] : memref<32x32xf32, #tpu.memory_space<vmem>>, vector<32x32xf32>
    %cst = arith.constant dense<0.000000e+00> : vector<8x32xf32>
    %2 = tpu.matmul %0, %1, %cst {dimension_numbers = #tpu.dot_dimension_numbers<[1], [0], [0], [1], [0, 0, 1, 1], [], []>} : vector<8x32xf32>, vector<32x32xf32>, vector<8x32xf32> -> vector<8x32xf32>
    %c0_3 = arith.constant 0 : index
    %c0_4 = arith.constant 0 : index
    %3 = vector.load %arg3[%c0_3, %c0_4] : memref<1x32xf32, #tpu.memory_space<vmem>>, vector<1x32xf32>
    %4 = vector.broadcast %3 : vector<1x32xf32> to vector<8x32xf32>
    %5 = arith.addf %2, %4 : vector<8x32xf32>
    %6 = math.tanh %5 : vector<8x32xf32>
    %c0_5 = arith.constant 0 : index
    %c0_6 = arith.constant 0 : index
    %7 = vector.load %arg4[%c0_5, %c0_6] : memref<32x128xf32, #tpu.memory_space<vmem>>, vector<32x128xf32>
    %cst_7 = arith.constant dense<0.000000e+00> : vector<8x128xf32>
    %8 = tpu.matmul %6, %7, %cst_7 {dimension_numbers = #tpu.dot_dimension_numbers<[1], [0], [0], [1], [0, 0, 1, 1], [], []>} : vector<8x32xf32>, vector<32x128xf32>, vector<8x128xf32> -> vector<8x128xf32>
    %c0_8 = arith.constant 0 : index
    %c0_9 = arith.constant 0 : index
    %9 = vector.load %arg5[%c0_8, %c0_9] : memref<1x128xf32, #tpu.memory_space<vmem>>, vector<1x128xf32>
    %10 = vector.broadcast %9 : vector<1x128xf32> to vector<8x128xf32>
    %11 = arith.addf %8, %10 : vector<8x128xf32>
    %c0_10 = arith.constant 0 : index
    %c0_11 = arith.constant 0 : index
    %12 = vector.load %arg6[%c0_10, %c0_11] : memref<8x128xf32, #tpu.memory_space<vmem>>, vector<8x128xf32>
    tpu.vector_store %arg6[%c0_10, %c0_11], %11 {strides = array<i32>} : memref<8x128xf32, #tpu.memory_space<vmem>>, vector<8x128xf32>,
    return
  }
  func.func @transform_0(%arg0: i32) -> (i32, i32) {
    %c0_i32 = arith.constant 0 : i32
    %c0_i32_0 = arith.constant 0 : i32
    return %arg0, %c0_i32 : i32, i32
  }
  func.func @transform_1(%arg0: i32) -> (i32, i32) {
    %c0_i32 = arith.constant 0 : i32
    %c0_i32_0 = arith.constant 0 : i32
    %c0_i32_1 = arith.constant 0 : i32
    return %c0_i32, %c0_i32_0 : i32, i32
  }
  func.func @transform_2(%arg0: i32) -> (i32, i32) {
    %c0_i32 = arith.constant 0 : i32
    %c0_i32_0 = arith.constant 0 : i32
    %c0_i32_1 = arith.constant 0 : i32
    return %c0_i32, %c0_i32_0 : i32, i32
  }
  func.func @transform_3(%arg0: i32) -> (i32, i32) {
    %c0_i32 = arith.constant 0 : i32
    %c0_i32_0 = arith.constant 0 : i32
    %c0_i32_1 = arith.constant 0 : i32
    return %c0_i32, %c0_i32_0 : i32, i32
  }
  func.func @transform_4(%arg0: i32) -> (i32, i32) {
    %c0_i32 = arith.constant 0 : i32
    %c0_i32_0 = arith.constant 0 : i32
    %c0_i32_1 = arith.constant 0 : i32
    return %c0_i32, %c0_i32_0 : i32, i32
  }
  func.func @transform_5(%arg0: i32) -> (i32, i32) {
    %c0_i32 = arith.constant 0 : i32
    %c0_i32_0 = arith.constant 0 : i32
    return %arg0, %c0_i32 : i32, i32
  }
}

module attributes {stable_mosaic.version = 11 : i64} {
  func.func @_cls_head_kernel(%arg0: i32, %arg1: memref<8x32xf32, #tpu.memory_space<vmem>>, %arg2: memref<32x32xf32, #tpu.memory_space<vmem>>, %arg3: memref<1x32xf32, #tpu.memory_space<vmem>>, %arg4: memref<32x128xf32, #tpu.memory_space<vmem>>, %arg5: memref<1x128xf32, #tpu.memory_space<vmem>>, %arg6: memref<8x128xf32, #tpu.memory_space<vmem>>) attributes {dimension_semantics = [#tpu.dimension_semantics<parallel>], iteration_bounds = array<i64: 1>, scalar_prefetch = 0 : i64, scratch_operands = 0 : i64, tpu.core_type = #tpu.core_type<tc>, window_params = [{transform_indices = @transform_0, window_bounds = array<i64: 8, 32>}, {pipeline_mode = #tpu.pipeline_mode<synchronous>, transform_indices = @transform_1, window_bounds = array<i64: 32, 32>}, {pipeline_mode = #tpu.pipeline_mode<synchronous>, transform_indices = @transform_2, window_bounds = array<i64: 1, 32>}, {pipeline_mode = #tpu.pipeline_mode<synchronous>, transform_indices = @transform_3, window_bounds = array<i64: 32, 128>}, {pipeline_mode = #tpu.pipeline_mode<synchronous>, transform_indices = @transform_4, window_bounds = array<i64: 1, 128>}, {transform_indices = @transform_5, window_bounds = array<i64: 8, 128>}]} {
    %c0 = arith.constant 0 : index
    %c0_0 = arith.constant 0 : index
    %0 = vector.load %arg1[%c0, %c0_0] : memref<8x32xf32, #tpu.memory_space<vmem>>, vector<8x32xf32>
    %c0_1 = arith.constant 0 : index
    %c0_2 = arith.constant 0 : index
    %1 = vector.load %arg2[%c0_1, %c0_2] : memref<32x32xf32, #tpu.memory_space<vmem>>, vector<32x32xf32>
    %cst = arith.constant dense<0.000000e+00> : vector<8x32xf32>
    %2 = tpu.matmul %0, %1, %cst {dimension_numbers = #tpu.dot_dimension_numbers<[1], [0], [0], [1], [0, 0, 1, 1], [], []>} : vector<8x32xf32>, vector<32x32xf32>, vector<8x32xf32> -> vector<8x32xf32>
    %c0_3 = arith.constant 0 : index
    %c0_4 = arith.constant 0 : index
    %3 = vector.load %arg3[%c0_3, %c0_4] : memref<1x32xf32, #tpu.memory_space<vmem>>, vector<1x32xf32>
    %4 = vector.broadcast %3 : vector<1x32xf32> to vector<8x32xf32>
    %5 = arith.addf %2, %4 : vector<8x32xf32>
    %6 = math.tanh %5 : vector<8x32xf32>
    %c0_5 = arith.constant 0 : index
    %c0_6 = arith.constant 0 : index
    %7 = vector.load %arg4[%c0_5, %c0_6] : memref<32x128xf32, #tpu.memory_space<vmem>>, vector<32x128xf32>
    %cst_7 = arith.constant dense<0.000000e+00> : vector<8x128xf32>
    %8 = tpu.matmul %6, %7, %cst_7 {dimension_numbers = #tpu.dot_dimension_numbers<[1], [0], [0], [1], [0, 0, 1, 1], [], []>} : vector<8x32xf32>, vector<32x128xf32>, vector<8x128xf32> -> vector<8x128xf32>
    %c0_8 = arith.constant 0 : index
    %c0_9 = arith.constant 0 : index
    %9 = vector.load %arg5[%c0_8, %c0_9] : memref<1x128xf32, #tpu.memory_space<vmem>>, vector<1x128xf32>
    %10 = vector.broadcast %9 : vector<1x128xf32> to vector<8x128xf32>
    %11 = arith.addf %8, %10 : vector<8x128xf32>
    %c0_10 = arith.constant 0 : index
    %c0_11 = arith.constant 0 : index
    %12 = vector.load %arg6[%c0_10, %c0_11] : memref<8x128xf32, #tpu.memory_space<vmem>>, vector<8x128xf32>
    tpu.vector_store %arg6[%c0_10, %c0_11], %11 {strides = array<i32>} : memref<8x128xf32, #tpu.memory_space<vmem>>, vector<8x128xf32>,
    return
  }
  func.func @transform_0(%arg0: i32) -> (i32, i32) {
    %c0_i32 = arith.constant 0 : i32
    %c0_i32_0 = arith.constant 0 : i32
    return %arg0, %c0_i32 : i32, i32
  }
  func.func @transform_1(%arg0: i32) -> (i32, i32) {
    %c0_i32 = arith.constant 0 : i32
    %c0_i32_0 = arith.constant 0 : i32
    %c0_i32_1 = arith.constant 0 : i32
    return %c0_i32, %c0_i32_0 : i32, i32
  }
  func.func @transform_2(%arg0: i32) -> (i32, i32) {
    %c0_i32 = arith.constant 0 : i32
    %c0_i32_0 = arith.constant 0 : i32
    %c0_i32_1 = arith.constant 0 : i32
    return %c0_i32, %c0_i32_0 : i32, i32
  }
  func.func @transform_3(%arg0: i32) -> (i32, i32) {
    %c0_i32 = arith.constant 0 : i32
    %c0_i32_0 = arith.constant 0 : i32
    %c0_i32_1 = arith.constant 0 : i32
    return %c0_i32, %c0_i32_0 : i32, i32
  }
  func.func @transform_4(%arg0: i32) -> (i32, i32) {
    %c0_i32 = arith.constant 0 : i32
    %c0_i32_0 = arith.constant 0 : i32
    %c0_i32_1 = arith.constant 0 : i32
    return %c0_i32, %c0_i32_0 : i32, i32
  }
  func.func @transform_5(%arg0: i32) -> (i32, i32) {
    %c0_i32 = arith.constant 0 : i32
    %c0_i32_0 = arith.constant 0 : i32
    return %arg0, %c0_i32 : i32, i32
  }
}

</mosaic_0001>

<bundles_post_ra>
// kernel: tpu_custom_call.1
= control target key start
LH: loop header
LB: loop body
LE: loop exit
PB: predicated region body
PF: predicated region fallthrough
CT: control target
= control target key end

     0   :  { %10 = vsyncpa [#allocation3], 0  ;;  %s516_s0 = inlined_call_operand.hbm [shape: f32[4,32], index: 0, kind: input, shape index: {}]   ;;  %s517_s1 = inlined_call_operand.hbm [shape: f32[32,32], index: 1, kind: input, shape index: {}]   ;;  %s518_s2 = inlined_call_operand.vmem [shape: f32[1,32], index: 2, kind: input, shape index: {}]   ;;  %s519_s3 = inlined_call_operand.hbm [shape: f32[32,128], index: 3, kind: input, shape index: {}]   ;;  %s520_s4 = inlined_call_operand.vmem [shape: f32[1,128], index: 4, kind: input, shape index: {}]   ;;  %s521_s5 = inlined_call_operand.hbm [shape: f32[4,128], index: 5, kind: output, shape index: {}]  }
   0x1   :  { %11 = vsyncpa [#allocation6], 0 }
   0x2   :  { %12 = vsyncpa [#allocation4], 0 }
   0x3   :  { %17 = vsyncadd [#allocation3], 64  ;;  %s407_s18 = smov [#allocation5]   ;;  %s313_s22 = scalar_lea.hbm %s517_s1, 512 }
   0x4   :  { %s30_s19 = sshll.u32 %s407_s18, 4  ;;  %p314_p0 = scmp.ne.s32.totalorder %s517_s1, %s313_s22  ;;  %s31_s19 = int_to_ptr.vmem [resolvable:$true] %s30_s19 }
   0x5   :  { %p317_p1 = scmp.lt.u32.totalorder %s313_s22, %s517_s1 }
   0x7   :  { %p319_p2 = pnand %p317_p1, %p314_p0 }
   0x9   :  { %322 = shalt.err (!%p319_p2)
}
   0xa   :  { %s323_s27 = scalar_lea.vmem %s31_s19, 512  ;;  %p328_p4 = scmp.lt.s32.totalorder %s31_s19, %s31_s19 }
   0xb   :  { %p324_p3 = scmp.ne.s32.totalorder %s31_s19, %s323_s27  ;;  %p329_p5 = scmp.lt.s32.totalorder %s323_s27, %s323_s27 }
   0xd   :  { %p330_p6 = por %p329_p5, %p328_p4 }
   0xf   :  { %p331_p7 = pnand %p330_p6, %p324_p3 }
  0x11   :  { %334 = shalt.err (!%p331_p7)
}
  0x12   :  { %s408_s28 = smov 128   ;;  %s409_s29 = smov 8  }
  0x13   :  { %36 = dma.hbm_to_vmem [thread:$0]  %s517_s1, 512, %s31_s19, [#allocation6], %s408_s28, %s408_s28, %s409_s29  }
  0x14   :  { %s410_s7 = smov [#allocation2]   ;;  %s335_s11 = scalar_lea.hbm %s516_s0, 64 }
  0x15   :  { %s18_s8 = sshll.u32 %s410_s7, 4  ;;  %p336_p8 = scmp.ne.s32.totalorder %s516_s0, %s335_s11  ;;  %s19_s8 = int_to_ptr.vmem [resolvable:$true] %s18_s8 }
  0x16   :  { %p339_p9 = scmp.lt.u32.totalorder %s335_s11, %s516_s0 }
  0x18   :  { %p341_p10 = pnand %p339_p9, %p336_p8 }
  0x1a   :  { %344 = shalt.err (!%p341_p10)
}
  0x1b   :  { %s345_s16 = scalar_lea.vmem %s19_s8, 64  ;;  %s349_s1 = scalar_lea.vmem %s19_s8, 128 }
  0x1c   :  { %p346_p11 = scmp.ne.s32.totalorder %s19_s8, %s345_s16  ;;  %p350_p12 = scmp.lt.s32.totalorder %s19_s8, %s19_s8 }
  0x1d   :  { %p351_p13 = scmp.lt.s32.totalorder %s349_s1, %s345_s16 }
  0x1f   :  { %p352_p0 = por %p351_p13, %p350_p12 }
  0x21   :  { %p353_p1 = pnand %p352_p0, %p346_p11 }
  0x23   :  { %356 = shalt.err (!%p353_p1)
}
  0x24   :  { %s411_s17 = smov 64   ;;  %s412_s18 = smov 4  }
  0x25   :  { %24 = dma.hbm_to_vmem [thread:$0]  %s516_s0, 64, %s19_s8, [#allocation3], %s411_s17, %s411_s17, %s412_s18  }
  0x26   :  { %s413_s21 = smov [#allocation7]   ;;  %s357_s25 = scalar_lea.hbm %s519_s3, 512 }
  0x27   :  { %s44_s22 = sshll.u32 %s413_s21, 4  ;;  %p358_p2 = scmp.ne.s32.totalorder %s519_s3, %s357_s25  ;;  %s45_s22 = int_to_ptr.vmem [resolvable:$true] %s44_s22 }
  0x28   :  { %p361_p3 = scmp.lt.u32.totalorder %s357_s25, %s519_s3 }
  0x2a   :  { %p363_p4 = pnand %p361_p3, %p358_p2 }
  0x2c   :  { %366 = shalt.err (!%p363_p4)
}
  0x2d   :  { %s367_s7 = scalar_lea.vmem %s45_s22, 512  ;;  %p372_p6 = scmp.lt.s32.totalorder %s45_s22, %s45_s22 }
  0x2e   :  { %p368_p5 = scmp.ne.s32.totalorder %s45_s22, %s367_s7  ;;  %p373_p7 = scmp.lt.s32.totalorder %s367_s7, %s367_s7 }
  0x30   :  { %p374_p8 = por %p373_p7, %p372_p6 }
  0x32   :  { %p375_p9 = pnand %p374_p8, %p368_p5 }
  0x34   :  { %378 = shalt.err (!%p375_p9)
}
  0x35   :  { %50 = dma.hbm_to_vmem [thread:$0]  %s519_s3, 512, %s45_s22, [#allocation6], %s408_s28, %s408_s28, %s409_s29  }
  0x36   :  { %401 = dma.done.wait [#allocation3], 128  }
  0x37   :  { %402 = vsyncadd [#allocation3], 4294967168 }
  0x38   :  { %403 = dma.done.wait [#allocation6], 1024  }
  0x39   :  { %404 = vsyncadd [#allocation6], 4294966272  ;;  %v414_v0 = vmov 0.0|0.0   ;;  %vm415_vm0 = vmmov 0   ;;  %v416_v1 = vmov 0.0   ;;  %v63_v2 = vld [vmem:[#allocation5] sm:$0xff] }
  0x3a   :  { %288 = vmatprep.subr.bf16.mxu0 %v414_v0  ;;  %274 = vmatprep.mubr.msk.f32.mxu0 %vm415_vm0, %v416_v1  ;;  %v64_v3 = vld [vmem:[#allocation5 + $0x8] sm:$0xff]  ;;  %v65_v4 = vld [vmem:[#allocation5 + $0x10] sm:$0xff]  ;;  %v66_v6 = vld [vmem:[#allocation5 + $0x18] sm:$0xff]  ;;  %vm74_vm1 = vcmask 261120  }
  0x3b   :  { %294 = vmatprep.subr.bf16.mxu1 %v414_v0  ;;  %285 = vmatprep.mubr.msk.f32.mxu1 %vm415_vm0, %v416_v1  ;;  %v289_v5 = vpack.c.bf16 %v64_v3, %v63_v2  ;;  %v292_v7 = vpack.c.bf16 %v66_v6, %v65_v4  ;;  %v62_v8 = vld [vmem:[#allocation2] sm:$0xff]  ;;  %v149_v9 = vld [vmem:[#allocation7] sm:$0xff]  ;;  %v150_v10 = vld [vmem:[#allocation7 + $0x8] sm:$0xff] }
  0x3c   :  { %v151_v11 = vld [vmem:[#allocation7 + $0x10] sm:$0xff]  ;;  %v295_v12 = vpack.c.bf16 %v150_v10, %v149_v9  ;;  %v152_v13 = vld [vmem:[#allocation7 + $0x18] sm:$0xff] }
  0x3d   :  { %290 = vmatpush3.bf16.msra.mxu0 %v289_v5  ;;  %v298_v14 = vpack.c.bf16 %v152_v13, %v151_v11  ;;  %v252_v15 = vld [vmem:[%s518_s2] ss:$0 sm:$0xff] }
  0x3e   :  { %291 = vmatprep.subr.bf16.mxu0 %v414_v0  ;;  %296 = vmatpush3.bf16.msra.mxu1 %v295_v12  ;;  %v254_v20 = vld [vmem:[%s520_s4] ss:$0 sm:$0xff] }
  0x3f   :  { %297 = vmatprep.subr.bf16.mxu1 %v414_v0 }
  0x41   :  { %293 = vmatpush3.bf16.msra.mxu0 %v292_v7 }
  0x42   :  { %299 = vmatpush3.bf16.msra.mxu1 %v298_v14 }
  0x44   :  { %275 = vmatmul.mubr.msk.f32.vlgmr.msra.gmra.mrb[0].mxu0 %vm74_vm1, %v62_v8 }
 0x117   :  { %v144_v16 = vpop.f32.mrb[0].mxu0 }
 0x118   :  { %v145_v17 = vadd.f32 %v252_v15, %v144_v16  ;;  %v276_v18 = vpop.f32.mrb[1].mxu0 }
 0x11a   :  { %311 = vtanh.f32 %v145_v17 }
 0x124   :  { %v312_v19 = vpop.eup %311 }
 0x125   :  { %286 = vmatmul.mubr.msk.f32.vlgmr.msra.gmra.mrb[0].mxu1 %vm74_vm1, %v312_v19 }
 0x1f8   :  { %v229_v21 = vpop.f32.mrb[0].mxu1 }
 0x1f9   :  { %v230_v22 = vadd.f32 %v254_v20, %v229_v21  ;;  %v287_v23 = vpop.f32.mrb[1].mxu1 }
 0x1fb   :  { %233 = vst [vmem:[#allocation8] sm:$0xff] %v230_v22 }
 0x1fc   :  { %238 = vsyncadd [#allocation4], 64  ;;  %s417_s10 = smov [#allocation8]  }
 0x1fd   :  { %s239_s11 = sshll.u32 %s417_s10, 4  ;;  %s240_s11 = int_to_ptr.vmem [resolvable:$true] %s239_s11 }
 0x1fe   :  { %s379_s2 = scalar_lea.vmem %s240_s11, 64  ;;  %s383_s12 = scalar_lea.vmem %s240_s11, 128 }
 0x1ff   :  { %p380_p10 = scmp.ne.s32.totalorder %s240_s11, %s379_s2  ;;  %p384_p11 = scmp.lt.s32.totalorder %s240_s11, %s240_s11 }
 0x200   :  { %p385_p12 = scmp.lt.s32.totalorder %s383_s12, %s379_s2 }
 0x202   :  { %p386_p13 = por %p385_p12, %p384_p11 }
 0x204   :  { %p387_p0 = pnand %p386_p13, %p380_p10 }
 0x206   :  { %390 = shalt.err (!%p387_p0)
}
 0x207   :  { %s391_s4 = scalar_lea.hbm %s521_s5, 64 }
 0x208   :  { %p392_p1 = scmp.ne.s32.totalorder %s521_s5, %s391_s4  ;;  %p395_p2 = scmp.lt.u32.totalorder %s391_s4, %s521_s5 }
 0x20a   :  { %p397_p3 = pnand %p395_p2, %p392_p1 }
 0x20c   :  { %400 = shalt.err (!%p397_p3)
}
 0x20d   :  { %245 = dma.vmem_to_hbm [thread:$0]  %s240_s11, 64, %s521_s5, [#allocation4], %s411_s17, %s411_s17, %s412_s18  }
 0x20e   :  { %405 = dma.done.wait [#allocation4], 128  }
 0x20f   :  { %406 = vsyncadd [#allocation4], 4294967168 }
 0x210   :  { %249 = vsyncpa [#allocation3], 1 }
 0x211   :  { %250 = vsyncpa [#allocation6], 1 }
 0x212   :  { %251 = vsyncpa [#allocation4], 1 }

// kernel: tpu_custom_call.1
= control target key start
LH: loop header
LB: loop body
LE: loop exit
PB: predicated region body
PF: predicated region fallthrough
CT: control target
= control target key end

     0   :  { %10 = vsyncpa [#allocation3], 0  ;;  %s516_s0 = inlined_call_operand.hbm [shape: f32[4,32], index: 0, kind: input, shape index: {}]   ;;  %s517_s1 = inlined_call_operand.hbm [shape: f32[32,32], index: 1, kind: input, shape index: {}]   ;;  %s518_s2 = inlined_call_operand.vmem [shape: f32[1,32], index: 2, kind: input, shape index: {}]   ;;  %s519_s3 = inlined_call_operand.hbm [shape: f32[32,128], index: 3, kind: input, shape index: {}]   ;;  %s520_s4 = inlined_call_operand.vmem [shape: f32[1,128], index: 4, kind: input, shape index: {}]   ;;  %s521_s5 = inlined_call_operand.hbm [shape: f32[4,128], index: 5, kind: output, shape index: {}]  }
   0x1   :  { %11 = vsyncpa [#allocation6], 0 }
   0x2   :  { %12 = vsyncpa [#allocation4], 0 }
   0x3   :  { %17 = vsyncadd [#allocation3], 64  ;;  %s407_s18 = smov [#allocation5]   ;;  %s313_s22 = scalar_lea.hbm %s517_s1, 512 }
   0x4   :  { %s30_s19 = sshll.u32 %s407_s18, 4  ;;  %p314_p0 = scmp.ne.s32.totalorder %s517_s1, %s313_s22  ;;  %s31_s19 = int_to_ptr.vmem [resolvable:$true] %s30_s19 }
   0x5   :  { %p317_p1 = scmp.lt.u32.totalorder %s313_s22, %s517_s1 }
   0x7   :  { %p319_p2 = pnand %p317_p1, %p314_p0 }
   0x9   :  { %322 = shalt.err (!%p319_p2)
}
   0xa   :  { %s323_s27 = scalar_lea.vmem %s31_s19, 512  ;;  %p328_p4 = scmp.lt.s32.totalorder %s31_s19, %s31_s19 }
   0xb   :  { %p324_p3 = scmp.ne.s32.totalorder %s31_s19, %s323_s27  ;;  %p329_p5 = scmp.lt.s32.totalorder %s323_s27, %s323_s27 }
   0xd   :  { %p330_p6 = por %p329_p5, %p328_p4 }
   0xf   :  { %p331_p7 = pnand %p330_p6, %p324_p3 }
  0x11   :  { %334 = shalt.err (!%p331_p7)
}
  0x12   :  { %s408_s28 = smov 128   ;;  %s409_s29 = smov 8  }
  0x13   :  { %36 = dma.hbm_to_vmem [thread:$0]  %s517_s1, 512, %s31_s19, [#allocation6], %s408_s28, %s408_s28, %s409_s29  }
  0x14   :  { %s410_s7 = smov [#allocation2]   ;;  %s335_s11 = scalar_lea.hbm %s516_s0, 64 }
  0x15   :  { %s18_s8 = sshll.u32 %s410_s7, 4  ;;  %p336_p8 = scmp.ne.s32.totalorder %s516_s0, %s335_s11  ;;  %s19_s8 = int_to_ptr.vmem [resolvable:$true] %s18_s8 }
  0x16   :  { %p339_p9 = scmp.lt.u32.totalorder %s335_s11, %s516_s0 }
  0x18   :  { %p341_p10 = pnand %p339_p9, %p336_p8 }
  0x1a   :  { %344 = shalt.err (!%p341_p10)
}
  0x1b   :  { %s345_s16 = scalar_lea.vmem %s19_s8, 64  ;;  %s349_s1 = scalar_lea.vmem %s19_s8, 128 }
  0x1c   :  { %p346_p11 = scmp.ne.s32.totalorder %s19_s8, %s345_s16  ;;  %p350_p12 = scmp.lt.s32.totalorder %s19_s8, %s19_s8 }
  0x1d   :  { %p351_p13 = scmp.lt.s32.totalorder %s349_s1, %s345_s16 }
  0x1f   :  { %p352_p0 = por %p351_p13, %p350_p12 }
  0x21   :  { %p353_p1 = pnand %p352_p0, %p346_p11 }
  0x23   :  { %356 = shalt.err (!%p353_p1)
}
  0x24   :  { %s411_s17 = smov 64   ;;  %s412_s18 = smov 4  }
  0x25   :  { %24 = dma.hbm_to_vmem [thread:$0]  %s516_s0, 64, %s19_s8, [#allocation3], %s411_s17, %s411_s17, %s412_s18  }
  0x26   :  { %s413_s21 = smov [#allocation7]   ;;  %s357_s25 = scalar_lea.hbm %s519_s3, 512 }
  0x27   :  { %s44_s22 = sshll.u32 %s413_s21, 4  ;;  %p358_p2 = scmp.ne.s32.totalorder %s519_s3, %s357_s25  ;;  %s45_s22 = int_to_ptr.vmem [resolvable:$true] %s44_s22 }
  0x28   :  { %p361_p3 = scmp.lt.u32.totalorder %s357_s25, %s519_s3 }
  0x2a   :  { %p363_p4 = pnand %p361_p3, %p358_p2 }
  0x2c   :  { %366 = shalt.err (!%p363_p4)
}
  0x2d   :  { %s367_s7 = scalar_lea.vmem %s45_s22, 512  ;;  %p372_p6 = scmp.lt.s32.totalorder %s45_s22, %s45_s22 }
  0x2e   :  { %p368_p5 = scmp.ne.s32.totalorder %s45_s22, %s367_s7  ;;  %p373_p7 = scmp.lt.s32.totalorder %s367_s7, %s367_s7 }
  0x30   :  { %p374_p8 = por %p373_p7, %p372_p6 }
  0x32   :  { %p375_p9 = pnand %p374_p8, %p368_p5 }
  0x34   :  { %378 = shalt.err (!%p375_p9)
}
  0x35   :  { %50 = dma.hbm_to_vmem [thread:$0]  %s519_s3, 512, %s45_s22, [#allocation6], %s408_s28, %s408_s28, %s409_s29  }
  0x36   :  { %401 = dma.done.wait [#allocation3], 128  }
  0x37   :  { %402 = vsyncadd [#allocation3], 4294967168 }
  0x38   :  { %403 = dma.done.wait [#allocation6], 1024  }
  0x39   :  { %404 = vsyncadd [#allocation6], 4294966272  ;;  %v414_v0 = vmov 0.0|0.0   ;;  %vm415_vm0 = vmmov 0   ;;  %v416_v1 = vmov 0.0   ;;  %v63_v2 = vld [vmem:[#allocation5] sm:$0xff] }
  0x3a   :  { %288 = vmatprep.subr.bf16.mxu0 %v414_v0  ;;  %274 = vmatprep.mubr.msk.f32.mxu0 %vm415_vm0, %v416_v1  ;;  %v64_v3 = vld [vmem:[#allocation5 + $0x8] sm:$0xff]  ;;  %v65_v4 = vld [vmem:[#allocation5 + $0x10] sm:$0xff]  ;;  %v66_v6 = vld [vmem:[#allocation5 + $0x18] sm:$0xff]  ;;  %vm74_vm1 = vcmask 261120  }
  0x3b   :  { %294 = vmatprep.subr.bf16.mxu1 %v414_v0  ;;  %285 = vmatprep.mubr.msk.f32.mxu1 %vm415_vm0, %v416_v1  ;;  %v289_v5 = vpack.c.bf16 %v64_v3, %v63_v2  ;;  %v292_v7 = vpack.c.bf16 %v66_v6, %v65_v4  ;;  %v62_v8 = vld [vmem:[#allocation2] sm:$0xff]  ;;  %v149_v9 = vld [vmem:[#allocation7] sm:$0xff]  ;;  %v150_v10 = vld [vmem:[#allocation7 + $0x8] sm:$0xff] }
  0x3c   :  { %v151_v11 = vld [vmem:[#allocation7 + $0x10] sm:$0xff]  ;;  %v295_v12 = vpack.c.bf16 %v150_v10, %v149_v9  ;;  %v152_v13 = vld [vmem:[#allocation7 + $0x18] sm:$0xff] }
  0x3d   :  { %290 = vmatpush3.bf16.msra.mxu0 %v289_v5  ;;  %v298_v14 = vpack.c.bf16 %v152_v13, %v151_v11  ;;  %v252_v15 = vld [vmem:[%s518_s2] ss:$0 sm:$0xff] }
  0x3e   :  { %291 = vmatprep.subr.bf16.mxu0 %v414_v0  ;;  %296 = vmatpush3.bf16.msra.mxu1 %v295_v12  ;;  %v254_v20 = vld [vmem:[%s520_s4] ss:$0 sm:$0xff] }
  0x3f   :  { %297 = vmatprep.subr.bf16.mxu1 %v414_v0 }
  0x41   :  { %293 = vmatpush3.bf16.msra.mxu0 %v292_v7 }
  0x42   :  { %299 = vmatpush3.bf16.msra.mxu1 %v298_v14 }
  0x44   :  { %275 = vmatmul.mubr.msk.f32.vlgmr.msra.gmra.mrb[0].mxu0 %vm74_vm1, %v62_v8 }
 0x117   :  { %v144_v16 = vpop.f32.mrb[0].mxu0 }
 0x118   :  { %v145_v17 = vadd.f32 %v252_v15, %v144_v16  ;;  %v276_v18 = vpop.f32.mrb[1].mxu0 }
 0x11a   :  { %311 = vtanh.f32 %v145_v17 }
 0x124   :  { %v312_v19 = vpop.eup %311 }
 0x125   :  { %286 = vmatmul.mubr.msk.f32.vlgmr.msra.gmra.mrb[0].mxu1 %vm74_vm1, %v312_v19 }
 0x1f8   :  { %v229_v21 = vpop.f32.mrb[0].mxu1 }
 0x1f9   :  { %v230_v22 = vadd.f32 %v254_v20, %v229_v21  ;;  %v287_v23 = vpop.f32.mrb[1].mxu1 }
 0x1fb   :  { %233 = vst [vmem:[#allocation8] sm:$0xff] %v230_v22 }
 0x1fc   :  { %238 = vsyncadd [#allocation4], 64  ;;  %s417_s10 = smov [#allocation8]  }
 0x1fd   :  { %s239_s11 = sshll.u32 %s417_s10, 4  ;;  %s240_s11 = int_to_ptr.vmem [resolvable:$true] %s239_s11 }
 0x1fe   :  { %s379_s2 = scalar_lea.vmem %s240_s11, 64  ;;  %s383_s12 = scalar_lea.vmem %s240_s11, 128 }
 0x1ff   :  { %p380_p10 = scmp.ne.s32.totalorder %s240_s11, %s379_s2  ;;  %p384_p11 = scmp.lt.s32.totalorder %s240_s11, %s240_s11 }
 0x200   :  { %p385_p12 = scmp.lt.s32.totalorder %s383_s12, %s379_s2 }
 0x202   :  { %p386_p13 = por %p385_p12, %p384_p11 }
 0x204   :  { %p387_p0 = pnand %p386_p13, %p380_p10 }
 0x206   :  { %390 = shalt.err (!%p387_p0)
}
 0x207   :  { %s391_s4 = scalar_lea.hbm %s521_s5, 64 }
 0x208   :  { %p392_p1 = scmp.ne.s32.totalorder %s521_s5, %s391_s4  ;;  %p395_p2 = scmp.lt.u32.totalorder %s391_s4, %s521_s5 }
 0x20a   :  { %p397_p3 = pnand %p395_p2, %p392_p1 }
 0x20c   :  { %400 = shalt.err (!%p397_p3)
}
 0x20d   :  { %245 = dma.vmem_to_hbm [thread:$0]  %s240_s11, 64, %s521_s5, [#allocation4], %s411_s17, %s411_s17, %s412_s18  }
 0x20e   :  { %405 = dma.done.wait [#allocation4], 128  }
 0x20f   :  { %406 = vsyncadd [#allocation4], 4294967168 }
 0x210   :  { %249 = vsyncpa [#allocation3], 1 }
 0x211   :  { %250 = vsyncpa [#allocation6], 1 }
 0x212   :  { %251 = vsyncpa [#allocation4], 1 }

</bundles_post_ra>
